<compile_context>
chip_gen: v7x
topology: tpu7x:2x2x1
jax: 0.10.0
libtpu: 0.0.40
codegen_flags: <defaults>
</compile_context>

<pallas_src>
import jax
import jax.numpy as jnp
from jax import lax
from jax.experimental import pallas as pl
from jax.experimental.pallas import tpu as pltpu


# ---------------------------------------------------------------------------
# helpers
# ---------------------------------------------------------------------------
def _pick_tile(full, unit, target):
    """Largest multiple of `unit` that divides `full` and is <= ~target.

    Falls back to `full` (full-extent block, always legal) when `full` is not
    a multiple of `unit`.
    """
    if full % unit != 0:
        return full
    t = min(full, max(unit, (target // unit) * unit))
    while full % t != 0:
        t -= unit
    return t


def _choose_fold(L, D):
    """Smallest TL dividing L with (TL*D) % 128 == 0 (lane-dense fold).

    Falls back to TL = L (full fold; last block dim equals the full array
    dim, which is always a legal block shape even if not lane-dense).
    """
    for tl in range(1, L + 1):
        if L % tl == 0 and (tl * D) % 128 == 0:
            return tl
    return L


# ---------------------------------------------------------------------------
# Stage 1: mean over relative-position embeddings  ->  (L, D) float32
# ---------------------------------------------------------------------------
def _make_mean_kernel(max_len, L, tl):
    inv_L = 1.0 / float(L)

    def kernel(emb_ref, mean_ref):
        V, _ = emb_ref.shape
        t = pl.program_id(0)

        # Selection matrix for rows [t*tl, t*tl+tl):
        #   rel_pos(i, j) = j - i + (max_len - 1)  =>  j = k - (max_len-1) + i
        #   M[i, k] = 1  iff  0 <= j < L
        local_i = lax.broadcasted_iota(jnp.int32, (tl, V), 0)
        col_k = lax.broadcasted_iota(jnp.int32, (tl, V), 1)
        row_i = local_i + t * tl
        j = col_k - (max_len - 1) + row_i
        valid = jnp.logical_and(j >= 0, j < L)

        # {0,1} selection matrix; the 1/L scale is applied after the dot so
        # the selection itself stays exact.
        M = jnp.where(valid, 1.0, 0.0).astype(jnp.float32)
        acc = jnp.dot(M, emb_ref[...].astype(jnp.float32),
                      preferred_element_type=jnp.float32)      # (tl, D)
        mean_ref[...] = (acc * inv_L).astype(mean_ref.dtype)

    return kernel


# ---------------------------------------------------------------------------
# Stage 2: pure tiled broadcast-add (memory bound hot loop)
# ---------------------------------------------------------------------------
def _bcast_add_kernel(x_ref, m_ref, o_ref):
    # x_ref: (1, TNL, CW), m_ref: (TNL, CW) float32, o_ref: (1, TNL, CW)
    # fp32 add is correct on all generations (v5e has no bf16 VPU path);
    # for f32 inputs the casts are no-ops.
    o_ref[...] = (x_ref[...].astype(jnp.float32)
                  + m_ref[...][None].astype(jnp.float32)).astype(o_ref.dtype)


# ---------------------------------------------------------------------------
# wrapper
# ---------------------------------------------------------------------------
def relative_position_encoding(x, rel_pos_emb_table, max_len):
    """x: (B, L, D); rel_pos_emb_table: (2*max_len-1, D)."""
    B, L, D = x.shape
    V = rel_pos_emb_table.shape[0]
    assert V == 2 * max_len - 1
    # The PyTorch module requires L <= max_len for valid embedding indices.
    assert L <= max_len
    itemsize = jnp.dtype(x.dtype).itemsize

    # ---- Stage 1: (L, D) mean of relative-position embeddings (one-shot) ----
    tl_mean = _pick_tile(L, 8, 256)
    mean_emb = pl.pallas_call(
        _make_mean_kernel(max_len, L, tl_mean),
        out_shape=jax.ShapeDtypeStruct((L, D), jnp.float32),
        grid=(L // tl_mean,),
        in_specs=[pl.BlockSpec((V, D), lambda t: (0, 0))],   # table stays resident
        out_specs=pl.BlockSpec((tl_mean, D), lambda t: (t, 0)),
        compiler_params=pltpu.CompilerParams(
            dimension_semantics=("parallel",)),
        cost_estimate=pl.CostEstimate(
            flops=2 * L * V * D,
            transcendentals=0,
            bytes_accessed=(V * D + L * D) * 4),
    )(rel_pos_emb_table)

    # ---- Stage 2: lane-dense, pipelined broadcast add over B and L-tiles ----
    TL = _choose_fold(L, D)          # fold TL sequence steps into the lane dim
    nLt = L // TL
    CW = TL * D                      # folded lane width (multiple of 128 when possible)

    xf = x.reshape(B, nLt, CW)
    mf = mean_emb.reshape(nLt, CW)

    # Row-tile over the folded L axis: target ~512 KiB blocks (well inside the
    # 32 MiB scoped-VMEM budget that also holds on v7x's 64 MiB VMEM, with
    # double-buffered in + out blocks).
    row_bytes = CW * itemsize
    target_rows = max(8, (512 * 1024) // max(row_bytes, 1))
    TNL = _pick_tile(nLt, 8, target_rows)

    out_f = pl.pallas_call(
        _bcast_add_kernel,
        out_shape=jax.ShapeDtypeStruct((B, nLt, CW), x.dtype),
        grid=(nLt // TNL, B),        # B is the inner axis -> mean block re-used
        in_specs=[
            pl.BlockSpec((1, TNL, CW), lambda t, b: (b, t, 0)),
            pl.BlockSpec((TNL, CW), lambda t, b: (t, 0)),
        ],
        out_specs=pl.BlockSpec((1, TNL, CW), lambda t, b: (b, t, 0)),
        compiler_params=pltpu.CompilerParams(
            dimension_semantics=("parallel", "parallel"),
            vmem_limit_bytes=32 * 1024 * 1024),
        cost_estimate=pl.CostEstimate(
            flops=B * L * D,
            transcendentals=0,
            bytes_accessed=2 * B * L * D * itemsize + L * D * 4),
    )(xf, mf)

    return out_f.reshape(B, L, D)


# ---------------------------------------------------------------------------
# reference + demo
# ---------------------------------------------------------------------------
def _reference(x, table, max_len):
    B, L, D = x.shape
    pos = jnp.arange(L)
    rel_pos = pos[None, :] - pos[:, None] + max_len - 1       # (L, L)
    rel_emb = table[rel_pos]                                   # (L, L, D)
    mean_emb = rel_emb.mean(axis=1)                            # (L, D)
    return x + mean_emb[None]


if __name__ == "__main__":
    key = jax.random.PRNGKey(0)
    k_x, k_emb = jax.random.split(key)

    B, L, D = 2, 8, 32
    max_len = 16
    V = 2 * max_len - 1

    x = jax.random.normal(k_x, (B, L, D), dtype=jnp.float32)
    # nn.Embedding default init: N(0, 1)
    rel_pos_emb_table = jax.random.normal(k_emb, (V, D), dtype=jnp.float32)

    out = relative_position_encoding(x, rel_pos_emb_table, max_len)
    out = jax.block_until_ready(out)

    ref = _reference(x, rel_pos_emb_table, max_len)
    assert out.shape == (B, L, D)
    assert jnp.allclose(out, ref, atol=1e-5, rtol=1e-5), "mismatch vs reference"

    print("KERNEL_OK")
</pallas_src>

<mosaic_0001>
module attributes {stable_mosaic.version = 11 : i64} {
  func.func @kernel(%arg0: i32, %arg1: memref<31x32xf32, #tpu.memory_space<vmem>>, %arg2: memref<8x32xf32, #tpu.memory_space<vmem>>) attributes {dimension_semantics = [#tpu.dimension_semantics<parallel>], iteration_bounds = array<i64: 1>, scalar_prefetch = 0 : i64, scratch_operands = 0 : i64, tpu.core_type = #tpu.core_type<tc>, window_params = [{pipeline_mode = #tpu.pipeline_mode<synchronous>, transform_indices = @transform_0, window_bounds = array<i64: 31, 32>}, {transform_indices = @transform_1, window_bounds = array<i64: 8, 32>}]} {
    %0 = tpu.iota {dimensions = array<i32: 0>} : vector<8x31xi32>
    %1 = tpu.iota {dimensions = array<i32: 1>} : vector<8x31xi32>
    %c8_i32 = arith.constant 8 : i32
    %2 = arith.muli %arg0, %c8_i32 : i32
    %3 = vector.broadcast %2 : i32 to vector<8x31xi32>
    %4 = arith.addi %0, %3 : vector<8x31xi32>
    %c15_i32 = arith.constant 15 : i32
    %5 = vector.broadcast %c15_i32 : i32 to vector<8x31xi32>
    %6 = arith.subi %1, %5 : vector<8x31xi32>
    %7 = arith.addi %6, %4 : vector<8x31xi32>
    %c0_i32 = arith.constant 0 : i32
    %8 = vector.broadcast %c0_i32 : i32 to vector<8x31xi32>
    %9 = arith.cmpi sge, %7, %8 : vector<8x31xi32>
    %c8_i32_0 = arith.constant 8 : i32
    %10 = vector.broadcast %c8_i32_0 : i32 to vector<8x31xi32>
    %11 = arith.cmpi slt, %7, %10 : vector<8x31xi32>
    %12 = arith.andi %9, %11 : vector<8x31xi1>
    %cst = arith.constant 1.000000e+00 : f32
    %cst_1 = arith.constant 0.000000e+00 : f32
    %13 = vector.broadcast %cst : f32 to vector<8x31xf32>
    %14 = vector.broadcast %cst_1 : f32 to vector<8x31xf32>
    %15 = arith.select %12, %13, %14 : vector<8x31xi1>, vector<8x31xf32>
    %c0 = arith.constant 0 : index
    %c0_2 = arith.constant 0 : index
    %16 = vector.load %arg1[%c0, %c0_2] : memref<31x32xf32, #tpu.memory_space<vmem>>, vector<31x32xf32>
    %cst_3 = arith.constant dense<0.000000e+00> : vector<8x32xf32>
    %17 = tpu.matmul %15, %16, %cst_3 {dimension_numbers = #tpu.dot_dimension_numbers<[1], [0], [0], [1], [0, 0, 1, 1], [], []>} : vector<8x31xf32>, vector<31x32xf32>, vector<8x32xf32> -> vector<8x32xf32>
    %cst_4 = arith.constant 1.250000e-01 : f32
    %18 = vector.broadcast %cst_4 : f32 to vector<8x32xf32>
    %19 = arith.mulf %17, %18 : vector<8x32xf32>
    %c0_5 = arith.constant 0 : index
    %c0_6 = arith.constant 0 : index
    %20 = vector.load %arg2[%c0_5, %c0_6] : memref<8x32xf32, #tpu.memory_space<vmem>>, vector<8x32xf32>
    tpu.vector_store %arg2[%c0_5, %c0_6], %19 {strides = array<i32>} : memref<8x32xf32, #tpu.memory_space<vmem>>, vector<8x32xf32>,
    return
  }
  func.func @transform_0(%arg0: i32) -> (i32, i32) {
    %c0_i32 = arith.constant 0 : i32
    %c0_i32_0 = arith.constant 0 : i32
    %c0_i32_1 = arith.constant 0 : i32
    return %c0_i32, %c0_i32_0 : i32, i32
  }
  func.func @transform_1(%arg0: i32) -> (i32, i32) {
    %c0_i32 = arith.constant 0 : i32
    %c0_i32_0 = arith.constant 0 : i32
    return %arg0, %c0_i32 : i32, i32
  }
}

</mosaic_0001>

<bundles_post_ra>
// kernel: tpu_custom_call.1
= control target key start
LH: loop header
LB: loop body
LE: loop exit
PB: predicated region body
PF: predicated region fallthrough
CT: control target
= control target key end

     0   :  { %6 = vsyncpa [#allocation3], 0  ;;  %s260_s0 = inlined_call_operand.hbm [shape: f32[31,32], index: 0, kind: input, shape index: {}]   ;;  %s261_s1 = inlined_call_operand.hbm [shape: f32[8,32], index: 1, kind: output, shape index: {}]  }
   0x1   :  { %7 = vsyncpa [#allocation4], 0  ;;  %s218_s6 = smov [#allocation2]   ;;  %s170_s10 = scalar_lea.hbm %s260_s0, 512 }
   0x2   :  { %s13_s7 = sshll.u32 %s218_s6, 4  ;;  %p171_p0 = scmp.ne.s32.totalorder %s260_s0, %s170_s10  ;;  %s14_s7 = int_to_ptr.vmem [resolvable:$true] %s13_s7 }
   0x3   :  { %p174_p1 = scmp.lt.u32.totalorder %s170_s10, %s260_s0 }
   0x5   :  { %p176_p2 = pnand %p174_p1, %p171_p0 }
   0x7   :  { %179 = shalt.err (!%p176_p2)
}
   0x8   :  { %s180_s15 = scalar_lea.vmem %s14_s7, 512  ;;  %p185_p4 = scmp.lt.s32.totalorder %s14_s7, %s14_s7 }
   0x9   :  { %p181_p3 = scmp.ne.s32.totalorder %s14_s7, %s180_s15  ;;  %p186_p5 = scmp.lt.s32.totalorder %s180_s15, %s180_s15 }
   0xb   :  { %p187_p6 = por %p186_p5, %p185_p4 }
   0xd   :  { %p188_p7 = pnand %p187_p6, %p181_p3 }
   0xf   :  { %191 = shalt.err (!%p188_p7)
}
  0x10   :  { %s219_s16 = smov 128   ;;  %s220_s17 = smov 8  }
  0x11   :  { %19 = dma.hbm_to_vmem [thread:$0]  %s260_s0, 512, %s14_s7, [#allocation3], %s219_s16, %s219_s16, %s220_s17  }
  0x12   :  { %214 = dma.done.wait [#allocation3], 512  }
  0x13   :  { %215 = vsyncadd [#allocation3], 4294966784  ;;  %v23_v0 = vlaneseq  ;;  %v221_v1 = vmov 0.0|0.0   ;;  %vm222_vm0 = vmmov 0   ;;  %v223_v4 = vmov 0.0   ;;  %v36_v7 = vld [vmem:[#allocation2] sm:$0xff] }
  0x14   :  { %155 = vmatprep.subr.bf16.mxu0 %v221_v1  ;;  %152 = vmatprep.mubr.msk.f32.mxu0 %vm222_vm0, %v223_v4  ;;  %v37_v8 = vld [vmem:[#allocation2 + $0x8] sm:$0xff]  ;;  %v38_v9 = vld [vmem:[#allocation2 + $0x10] sm:$0xff]  ;;  %vm44_vm1 = vcmask 1046528   ;;  %v39_v11 = vld [vmem:[#allocation2 + $0x18] sm:$0x7f]  ;;  %vm224_vm4 = vmmov 1  }
  0x15   :  { %v24_v2 = vshrl.u32 %v23_v0, 7  ;;  %v26_v3 = vand.u32 127, %v23_v0  ;;  %v156_v10 = vpack.c.bf16 %v37_v8, %v36_v7  ;;  %v159_v12 = vpack.c.bf16 %v39_v11, %v38_v9  ;;  %vm160_vm5 = vmpackc.low %vm44_vm1, %vm224_vm4  ;;  %s225_s0 = smov [#allocation5]  }
  0x16   :  { %vm40_vm7 = vcmask 252928   ;;  %s127_s20 = sshll.u32 %s225_s0, 4  ;;  %vm119_vm8 = vcmask 261120   ;;  %s128_s20 = int_to_ptr.vmem [resolvable:$true] %s127_s20 }
  0x17   :  { %v136_v5 = vadd.s32 4294967281, %v26_v3  ;;  %157 = vmatpush3.bf16.msra.mxu0 %v156_v10  ;;  %s192_s21 = scalar_lea.vmem %s128_s20, 128  ;;  %p197_p9 = scmp.lt.s32.totalorder %s128_s20, %s128_s20 }
  0x18   :  { %158 = vmatprep.subr.bf16.mxu0 %v221_v1  ;;  %p193_p8 = scmp.ne.s32.totalorder %s128_s20, %s192_s21  ;;  %p198_p10 = scmp.lt.s32.totalorder %s192_s21, %s192_s21 }
  0x19   :  { %v31_v6 = vadd.s32 %v136_v5, %v24_v2 }
  0x1a   :  { %p199_p11 = por %p198_p10, %p197_p9 }
  0x1b   :  { %vm32_vm2 = vcmp.ge.s32.totalorder %v31_v6, 0  ;;  %vm33_vm3 = vcmp.lt.s32.totalorder %v31_v6, 8  ;;  %161 = vmatpush3.bf16.msk.msra.mxu0 %vm160_vm5, %v159_v12 }
  0x1c   :  { %vm34_vm6 = vmand %vm32_vm2, %vm33_vm3  ;;  %p200_p12 = pnand %p199_p11, %p193_p8 }
  0x1d   :  { %v35_v13 = vsel %vm34_vm6, 1.0, %v223_v4 }
  0x1e   :  { %153 = vmatmul.mubr.msk.f32.vlgmr.msra.gmra.mrb[0].mxu0 %vm40_vm7, %v35_v13 }
  0xf1   :  { %v114_v14 = vpop.f32.mrb[0].mxu0 }
  0xf2   :  { %v118_v15 = vmul.f32 0.125, %v114_v14  ;;  %v154_v16 = vpop.f32.mrb[1].mxu0 }
  0xf4   :  { %120 = vst.msk [vmem:[#allocation5] sm:$0xff] %vm119_vm8, %v118_v15 }
  0xf5   :  { %203 = shalt.err (!%p200_p12)
}
  0xf6   :  { %s204_s24 = scalar_lea.hbm %s261_s1, 128 }
  0xf7   :  { %p205_p13 = scmp.ne.s32.totalorder %s261_s1, %s204_s24  ;;  %p208_p0 = scmp.lt.u32.totalorder %s204_s24, %s261_s1 }
  0xf9   :  { %p210_p1 = pnand %p208_p0, %p205_p13 }
  0xfb   :  { %213 = shalt.err (!%p210_p1)
}
  0xfc   :  { %130 = dma.vmem_to_hbm [thread:$0]  %s128_s20, 128, %s261_s1, [#allocation4]  }
  0xfd   :  { %216 = dma.done.wait [#allocation4], 128  }
  0xfe   :  { %217 = vsyncadd [#allocation4], 4294967168 }
  0xff   :  { %134 = vsyncpa [#allocation3], 1 }
 0x100   :  { %135 = vsyncpa [#allocation4], 1 }

</bundles_post_ra>
